<compile_context>
chip_gen: v7x
topology: tpu7x:2x2x1
jax: 0.10.0
libtpu: 0.0.40
codegen_flags: <defaults>
</compile_context>

<pallas_src>
import functools

import jax
import jax.numpy as jnp
from jax import lax
from jax.experimental import pallas as pl
from jax.experimental.pallas import tpu as pltpu


def _ce_block_kernel(logits_ref, labels_ref, out_ref, *, n_rows, block_rows):
    """One independent row-block: emit (loss partial sum, valid count) lane-dense."""
    x = logits_ref[...]                                  # (TN, C) native dtype
    labels = labels_ref[...]                             # (TN, 1) int32

    # Tail mask must be row-index based: OOB reads in the partial last block are garbage.
    row = pl.program_id(0) * block_rows + lax.broadcasted_iota(
        jnp.int32, (block_rows, 1), 0)                   # (TN, 1)
    in_range = row < n_rows
    # Valid rows: in range, not padding and not PyTorch's default ignore_index (-100).
    valid = in_range & (labels >= 0)                     # (TN, 1) bool

    # Numerically stable LSE, keeping only ONE full-width f32 intermediate (shifted).
    m = jnp.max(x, axis=-1, keepdims=True)               # (TN, 1) native dtype
    shifted = (x - m).astype(jnp.float32)                # (TN, C) f32
    sum_exp = jnp.sum(jnp.exp(shifted), axis=-1, keepdims=True)   # (TN, 1)
    lse_part = jnp.log(sum_exp)                          # (TN, 1) == lse - m

    # Target gather via one-hot mask on the SAME shifted tile (no dynamic lane gather).
    col = lax.broadcasted_iota(jnp.int32, shifted.shape, 1)       # (TN, C)
    tgt_shifted = jnp.sum(jnp.where(col == labels, shifted, 0.0),
                          axis=-1, keepdims=True)        # (TN, 1) == x[target] - m

    # loss = lse - x[target] = lse_part - tgt_shifted
    per_row_loss = jnp.where(valid, lse_part - tgt_shifted, 0.0)  # (TN, 1)
    loss_sum = jnp.sum(per_row_loss)                      # scalar
    cnt = jnp.sum(valid.astype(jnp.float32))              # scalar

    # Pack the two scalars into a lane-dense (1, 128) tile: lane 0 = sum, lane 1 = count.
    lane = lax.broadcasted_iota(jnp.int32, (1, 128), 1)
    payload = jnp.where(lane == 0, loss_sum,
                        jnp.where(lane == 1, cnt, 0.0))
    out_ref[...] = payload[None, :, :]                    # (1, 1, 128)


def _vmem_capacity_bytes():
    try:
        return int(pltpu.get_tpu_info().vmem_capacity_bytes)
    except Exception:
        # Conservative fallback (v7x has 64 MiB per TensorCore).
        return 64 * 1024 * 1024


def _choose_block_rows(n, num_classes, itemsize):
    """Largest row tile (multiple of 32) whose full footprint fits the VMEM budget."""
    cap = _vmem_capacity_bytes()
    vmem_limit = min((cap * 3) // 4, 96 * 1024 * 1024)    # leave >= 25% headroom

    # Honest per-row accounting:
    #   2x double-buffered logits DMA buffers (native dtype)
    # + ~3 full-width f32 in-kernel intermediates (shifted, exp, one-hot select)
    # + 2x double-buffered labels buffers, lane-padded to 128 lanes of i32
    per_row_bytes = 2 * num_classes * itemsize + 3 * num_classes * 4 + 2 * 128 * 4
    tile_budget = (vmem_limit * 3) // 4
    tn = tile_budget // max(per_row_bytes, 1)

    # Hard-cap the f32 working tile (tn * C * 4) at 8 MiB.
    tn = min(tn, (8 * 1024 * 1024) // max(num_classes * 4, 1))
    tn = (tn // 32) * 32
    # 512-1024 rows is already at HBM roofline; don't go bigger.
    tn = max(32, min(int(tn), 1024))

    # v7x has 2 TensorCores: if the whole row range fits in one block, split into >= 2
    # blocks so both cores get work (negligible cost on single-TC v5e/v6e).
    if n >= 64 and tn >= n:
        half = (((n + 1) // 2) + 31) // 32 * 32
        tn = min(tn, max(32, half))

    # Don't tile past the row count (rounded up to 32) for tiny problems.
    n_up32 = ((n + 31) // 32) * 32
    tn = min(tn, n_up32)
    return tn, vmem_limit


def classification_loss(logits, target_labels):
    """Cross-entropy loss, mean reduction, matching nn.CrossEntropyLoss() defaults."""
    num_classes = logits.shape[-1]
    logits_flat = logits.reshape(-1, num_classes)         # keep native dtype (bf16 stays bf16)
    labels_flat = target_labels.reshape(-1, 1).astype(jnp.int32)
    n = logits_flat.shape[0]

    itemsize = jnp.dtype(logits_flat.dtype).itemsize
    tn, vmem_limit = _choose_block_rows(n, num_classes, itemsize)

    # No padding of logits: partial last block is handled in-kernel with a row-index mask.
    num_blocks = pl.cdiv(n, tn)

    kernel = functools.partial(_ce_block_kernel, n_rows=n, block_rows=tn)

    partials = pl.pallas_call(
        kernel,
        out_shape=jax.ShapeDtypeStruct((num_blocks, 1, 128), jnp.float32),
        grid=(num_blocks,),
        in_specs=[
            pl.BlockSpec((tn, num_classes), lambda i: (i, 0)),
            pl.BlockSpec((tn, 1), lambda i: (i, 0)),
        ],
        out_specs=pl.BlockSpec((1, 1, 128), lambda i: (i, 0, 0)),
        compiler_params=pltpu.CompilerParams(
            dimension_semantics=("parallel",),
            vmem_limit_bytes=int(vmem_limit),
        ),
    )(logits_flat, labels_flat)

    # Tiny epilogue reduction in plain JAX: lane 0 carries loss sums, lane 1 valid counts.
    totals = jnp.sum(partials, axis=(0, 1))               # (128,)
    # NOTE: if every target is ignored (count == 0) this is 0/0 = NaN, matching PyTorch.
    return totals[0] / totals[1]


def _reference_loss(logits, target_labels):
    num_classes = logits.shape[-1]
    lf = logits.reshape(-1, num_classes).astype(jnp.float32)
    tf = target_labels.reshape(-1)
    logp = jax.nn.log_softmax(lf, axis=-1)
    nll = -jnp.take_along_axis(logp, tf[:, None], axis=-1)[:, 0]
    return jnp.mean(nll)


if __name__ == "__main__":
    key = jax.random.PRNGKey(0)
    k1, k2 = jax.random.split(key)

    batch, seq, num_classes = 2, 8, 32
    logits = jax.random.normal(k1, (batch, seq, num_classes), dtype=jnp.float32)
    target_labels = jax.random.randint(k2, (batch, seq), 0, num_classes, dtype=jnp.int32)

    loss = classification_loss(logits, target_labels)
    jax.block_until_ready(loss)

    ref = _reference_loss(logits, target_labels)
    assert jnp.allclose(loss, ref, atol=1e-5, rtol=1e-5), (loss, ref)

    print("KERNEL_OK")
</pallas_src>

<mosaic_0001>
module attributes {stable_mosaic.version = 11 : i64} {
  func.func @_ce_block_kernel(%arg0: i32, %arg1: memref<32x32xf32, #tpu.memory_space<vmem>>, %arg2: memref<32x1xi32, #tpu.memory_space<vmem>>, %arg3: memref<1x1x128xf32, #tpu.memory_space<vmem>>) attributes {dimension_semantics = [#tpu.dimension_semantics<parallel>], iteration_bounds = array<i64: 1>, scalar_prefetch = 0 : i64, scratch_operands = 0 : i64, tpu.core_type = #tpu.core_type<tc>, window_params = [{transform_indices = @transform_0, window_bounds = array<i64: 32, 32>}, {transform_indices = @transform_1, window_bounds = array<i64: 32, 1>}, {transform_indices = @transform_2, window_bounds = array<i64: 1, 1, 128>}]} {
    %c0 = arith.constant 0 : index
    %c0_0 = arith.constant 0 : index
    %0 = vector.load %arg1[%c0, %c0_0] : memref<32x32xf32, #tpu.memory_space<vmem>>, vector<32x32xf32>
    %c0_1 = arith.constant 0 : index
    %c0_2 = arith.constant 0 : index
    %1 = vector.load %arg2[%c0_1, %c0_2] : memref<32x1xi32, #tpu.memory_space<vmem>>, vector<32x1xi32>
    %c32_i32 = arith.constant 32 : i32
    %2 = arith.muli %arg0, %c32_i32 : i32
    %3 = tpu.iota {dimensions = array<i32: 0>} : vector<32x1xi32>
    %4 = vector.broadcast %2 : i32 to vector<32x1xi32>
    %5 = arith.addi %4, %3 : vector<32x1xi32>
    %c16_i32 = arith.constant 16 : i32
    %6 = vector.broadcast %c16_i32 : i32 to vector<32x1xi32>
    %7 = arith.cmpi slt, %5, %6 : vector<32x1xi32>
    %c0_i32 = arith.constant 0 : i32
    %8 = vector.broadcast %c0_i32 : i32 to vector<32x1xi32>
    %9 = arith.cmpi sge, %1, %8 : vector<32x1xi32>
    %10 = arith.andi %7, %9 : vector<32x1xi1>
    %cst = arith.constant dense<0xFF800000> : vector<32xf32>
    %11 = vector.multi_reduction <maximumf>, %0, %cst [1] : vector<32x32xf32> to vector<32xf32>
    %12 = vector.shape_cast %11 : vector<32xf32> to vector<32x1xf32>
    %13 = vector.broadcast %12 : vector<32x1xf32> to vector<32x32xf32>
    %14 = arith.subf %0, %13 : vector<32x32xf32>
    %15 = math.exp %14 : vector<32x32xf32>
    %cst_3 = arith.constant dense<0.000000e+00> : vector<32xf32>
    %16 = vector.multi_reduction <add>, %15, %cst_3 [1] : vector<32x32xf32> to vector<32xf32>
    %17 = vector.shape_cast %16 : vector<32xf32> to vector<32x1xf32>
    %18 = math.log %17 : vector<32x1xf32>
    %19 = tpu.iota {dimensions = array<i32: 1>} : vector<32x32xi32>
    %20 = vector.broadcast %1 : vector<32x1xi32> to vector<32x32xi32>
    %21 = arith.cmpi eq, %19, %20 : vector<32x32xi32>
    %cst_4 = arith.constant 0.000000e+00 : f32
    %22 = vector.broadcast %cst_4 : f32 to vector<32x32xf32>
    %23 = arith.select %21, %14, %22 : vector<32x32xi1>, vector<32x32xf32>
    %cst_5 = arith.constant dense<0.000000e+00> : vector<32xf32>
    %24 = vector.multi_reduction <add>, %23, %cst_5 [1] : vector<32x32xf32> to vector<32xf32>
    %25 = vector.shape_cast %24 : vector<32xf32> to vector<32x1xf32>
    %26 = arith.subf %18, %25 : vector<32x1xf32>
    %cst_6 = arith.constant 0.000000e+00 : f32
    %27 = vector.broadcast %cst_6 : f32 to vector<32x1xf32>
    %28 = arith.select %10, %26, %27 : vector<32x1xi1>, vector<32x1xf32>
    %29 = vector.shape_cast %28 : vector<32x1xf32> to vector<1x32x1xf32>
    %cst_7 = arith.constant dense<0.000000e+00> : vector<1xf32>
    %30 = vector.multi_reduction <add>, %29, %cst_7 [1, 2] : vector<1x32x1xf32> to vector<1xf32>
    %31 = vector.shape_cast %30 : vector<1xf32> to vector<1x1x1xf32>
    %32 = vector.extract %31[0, 0, 0] : f32 from vector<1x1x1xf32>
    %33 = arith.extui %10 : vector<32x1xi1> to vector<32x1xi32>
    %34 = arith.sitofp %33 : vector<32x1xi32> to vector<32x1xf32>
    %35 = vector.shape_cast %34 : vector<32x1xf32> to vector<1x32x1xf32>
    %cst_8 = arith.constant dense<0.000000e+00> : vector<1xf32>
    %36 = vector.multi_reduction <add>, %35, %cst_8 [1, 2] : vector<1x32x1xf32> to vector<1xf32>
    %37 = vector.shape_cast %36 : vector<1xf32> to vector<1x1x1xf32>
    %38 = vector.extract %37[0, 0, 0] : f32 from vector<1x1x1xf32>
    %39 = tpu.iota {dimensions = array<i32: 1>} : vector<1x128xi32>
    %c0_i32_9 = arith.constant 0 : i32
    %40 = vector.broadcast %c0_i32_9 : i32 to vector<1x128xi32>
    %41 = arith.cmpi eq, %39, %40 : vector<1x128xi32>
    %c1_i32 = arith.constant 1 : i32
    %42 = vector.broadcast %c1_i32 : i32 to vector<1x128xi32>
    %43 = arith.cmpi eq, %39, %42 : vector<1x128xi32>
    %cst_10 = arith.constant 0.000000e+00 : f32
    %44 = vector.broadcast %38 : f32 to vector<1x128xf32>
    %45 = vector.broadcast %cst_10 : f32 to vector<1x128xf32>
    %46 = arith.select %43, %44, %45 : vector<1x128xi1>, vector<1x128xf32>
    %47 = vector.broadcast %32 : f32 to vector<1x128xf32>
    %48 = arith.select %41, %47, %46 : vector<1x128xi1>, vector<1x128xf32>
    %49 = vector.shape_cast %48 : vector<1x128xf32> to vector<1x1x128xf32>
    %c0_11 = arith.constant 0 : index
    %c0_12 = arith.constant 0 : index
    %c0_13 = arith.constant 0 : index
    %50 = vector.load %arg3[%c0_11, %c0_12, %c0_13] : memref<1x1x128xf32, #tpu.memory_space<vmem>>, vector<1x1x128xf32>
    tpu.vector_store %arg3[%c0_11, %c0_12, %c0_13], %49 {strides = array<i32>} : memref<1x1x128xf32, #tpu.memory_space<vmem>>, vector<1x1x128xf32>,
    return
  }
  func.func @transform_0(%arg0: i32) -> (i32, i32) {
    %c0_i32 = arith.constant 0 : i32
    %c0_i32_0 = arith.constant 0 : i32
    return %arg0, %c0_i32 : i32, i32
  }
  func.func @transform_1(%arg0: i32) -> (i32, i32) {
    %c0_i32 = arith.constant 0 : i32
    %c0_i32_0 = arith.constant 0 : i32
    return %arg0, %c0_i32 : i32, i32
  }
  func.func @transform_2(%arg0: i32) -> (i32, i32, i32) {
    %c0_i32 = arith.constant 0 : i32
    %c0_i32_0 = arith.constant 0 : i32
    %c0_i32_1 = arith.constant 0 : i32
    return %arg0, %c0_i32, %c0_i32_0 : i32, i32, i32
  }
}

</mosaic_0001>

<bundles_post_ra>
// kernel: tpu_custom_call.1
= control target key start
LH: loop header
LB: loop body
LE: loop exit
PB: predicated region body
PF: predicated region fallthrough
CT: control target
= control target key end

     0   :  { %vm43_vm0 = vcmask 261120   ;;  %v235_v4 = vmov 0   ;;  %s297_s0 = inlined_call_operand.vmem [shape: f32[16,32], index: 0, kind: input, shape index: {}]   ;;  %s298_s1 = inlined_call_operand.vmem [shape: s32[16,1], index: 1, kind: input, shape index: {}]   ;;  %s299_s2 = inlined_call_operand.hbm [shape: f32[1,1,128], index: 2, kind: output, shape index: {}]  }
   0x1   :  { %v12_v0 = vld [vmem:[%s297_s0] sm:$0xff]  ;;  %v13_v1 = vld [vmem:[%s297_s0 + $0x8] sm:$0xff]  ;;  %201 = vset.pattern.permute.xlu1 %v235_v4  ;;  %202 = vset.pattern.permute.xlu0 %v235_v4 }
   0x2   :  { %v16_v2 = vld [vmem:[%s298_s1] sm:$0xff]  ;;  %v44_v3 = vsel %vm43_vm0, %v12_v0, -inf }
   0x3   :  { %7 = vsyncpa [#allocation3], 0  ;;  %45 = vmax.xlane.f32.xlu0 %v44_v3  ;;  %91 = vperm.xlu1 %201, %v16_v2   ;;  %v47_v5 = vsel %vm43_vm0, %v13_v1, -inf  ;;  %v17_v6 = vld [vmem:[%s298_s1 + $0x8] sm:$0xff]  ;;  %v88_v12 = vlaneseq  ;;  %vm35_vm3 = vcmp.ge.s32.totalorder %v16_v2, 0  ;;  %v236_v25 = vmov 0.0  }
   0x4   :  { %v192_v26 = vsel %vm35_vm3, 1.0, %v236_v25  ;;  %vm36_vm4 = vcmp.ge.s32.totalorder %v17_v6, 0  ;;  %vm130_vm5 = vcmask 7168   ;;  %s237_s1 = smov [#allocation2]  }
   0x5   :  { %v267_v15 = vand.u32 127, %v88_v12  ;;  %v193_v27 = vsel %vm36_vm4, 1.0, %v236_v25  ;;  %v155_v28 = vsel %vm130_vm5, %v192_v26, 0.0  ;;  %s184_s17 = sshll.u32 %s237_s1, 4  ;;  %s185_s17 = int_to_ptr.vmem [resolvable:$true] %s184_s17 }
   0x6   :  { %v156_v29 = vsel %vm130_vm5, %v193_v27, 0.0  ;;  %s211_s19 = scalar_lea.vmem %s185_s17, 16  ;;  %s215_s20 = scalar_lea.vmem %s185_s17, 32 }
   0x7   :  { %48 = vmax.xlane.f32.xlu0 %v47_v5  ;;  %94 = vperm.xlu1 %201, %v17_v6   ;;  %v157_v30 = vadd.f32 %v156_v29, %v155_v28  ;;  %vm172_vm6 = vcmp.eq.s32.totalorder %v267_v15, 1  ;;  %vm171_vm7 = vcmp.eq.s32.totalorder %v267_v15, 0  ;;  %p212_p0 = scmp.ne.s32.totalorder %s185_s17, %s211_s19  ;;  %p216_p1 = scmp.lt.s32.totalorder %s185_s17, %s185_s17 }
   0x8   :  { %p217_p2 = scmp.lt.s32.totalorder %s215_s20, %s211_s19 }
   0xa   :  { %p218_p3 = por %p217_p2, %p216_p1 }
   0xc   :  { %p219_p4 = pnand %p218_p3, %p212_p0 }
  0x82   :  { %v92_v14 = vpop.permute.xlu1 %91 }
  0x83   :  { %vm102_vm1 = vcmp.eq.s32.totalorder %v267_v15, %v92_v14 }
  0x86   :  { %v95_v17 = vpop.permute.xlu1 %94 }
  0x87   :  { %vm103_vm2 = vcmp.eq.s32.totalorder %v267_v15, %v95_v17 }
  0x90   :  { %v46_v7 = vpop.xlane.xlu0 %45 }
  0x91   :  { %v56_v8 = vsub.f32 %v12_v0, %v46_v7 }
  0x93   :  { %v60_v9 = vmul.f32 1.442695, %v56_v8  ;;  %v106_v19 = vsel %vm102_vm1, %v56_v8, 0.0 }
  0x94   :  { %v49_v10 = vpop.xlane.xlu0 %48  ;;  %v110_v21 = vsel %vm43_vm0, %v106_v19, 0.0 }
  0x95   :  { %203 = vpow2.f32 %v60_v9  ;;  %v57_v11 = vsub.f32 %v13_v1, %v49_v10 }
  0x97   :  { %v62_v13 = vmul.f32 1.442695, %v57_v11  ;;  %v107_v23 = vsel %vm103_vm2, %v57_v11, 0.0 }
  0x98   :  { %v113_v24 = vsel %vm43_vm0, %v107_v23, 0.0 }
  0x99   :  { %205 = vpow2.f32 %v62_v13 }
  0x9f   :  { %v204_v16 = vpop.eup %203 }
  0xa0   :  { %v68_v18 = vsel %vm43_vm0, %v204_v16, 0.0 }
  0xa1   :  { %69 = vadd.xlane.f32.xlu0 %v68_v18 }
  0xa3   :  { %v206_v20 = vpop.eup %205 }
  0xa4   :  { %v71_v22 = vsel %vm43_vm0, %v206_v20, 0.0 }
  0xa5   :  { %111 = vadd.xlane.f32.xlu0 %v110_v21  ;;  %72 = vadd.xlane.f32.xlu1 %v71_v22 }
  0xa9   :  { %114 = vadd.xlane.f32.xlu0 %v113_v24 }
 0x12e   :  { %v70_v31 = vpop.xlane.xlu0 %69 }
 0x12f   :  { %207 = vlog2.f32 %v70_v31 }
 0x132   :  { %v73_v32 = vpop.xlane.xlu1 %72  ;;  %v112_v34 = vpop.xlane.xlu0 %111 }
 0x133   :  { %209 = vlog2.f32 %v73_v32 }
 0x136   :  { %v115_v39 = vpop.xlane.xlu0 %114 }
 0x139   :  { %v208_v33 = vpop.eup %207 }
 0x13a   :  { %v81_v35 = vmul.f32 0.6931472, %v208_v33 }
 0x13c   :  { %v122_v36 = vsub.f32 %v81_v35, %v112_v34 }
 0x13d   :  { %v210_v37 = vpop.eup %209 }
 0x13e   :  { %v83_v38 = vmul.f32 0.6931472, %v210_v37  ;;  %v126_v40 = vsel %vm35_vm3, %v122_v36, 0.0 }
 0x13f   :  { %v131_v43 = vsel %vm130_vm5, %v126_v40, 0.0 }
 0x140   :  { %v123_v41 = vsub.f32 %v83_v38, %v115_v39 }
 0x142   :  { %v127_v42 = vsel %vm36_vm4, %v123_v41, 0.0 }
 0x143   :  { %v132_v44 = vsel %vm130_vm5, %v127_v42, 0.0 }
 0x144   :  { %v133_v45 = vadd.f32 %v132_v44, %v131_v43 }
 0x146   :  { %138 = vadd.xlane.f32.xlu0 %v133_v45 }
 0x14a   :  { %162 = vadd.xlane.f32.xlu0 %v157_v30 }
 0x1d3   :  { %v139_v46 = vpop.xlane.xlu0 %138 }
 0x1d4   :  { %v140_v47 = vrot.slane %v139_v46, 4 }
 0x1d6   :  { %v141_v48 = vadd.f32 %v140_v47, %v139_v46 }
 0x1d7   :  { %v163_v49 = vpop.xlane.xlu0 %162 }
 0x1d8   :  { %v142_v50 = vrot.slane %v141_v48, 2  ;;  %v164_v51 = vrot.slane %v163_v49, 4 }
 0x1da   :  { %v165_v52 = vadd.f32 %v164_v51, %v163_v49  ;;  %v143_v53 = vadd.f32 %v142_v50, %v141_v48 }
 0x1dc   :  { %v166_v54 = vrot.slane %v165_v52, 2  ;;  %v144_v55 = vrot.slane %v143_v53, 1 }
 0x1de   :  { %v167_v56 = vadd.f32 %v166_v54, %v165_v52  ;;  %v145_v57 = vadd.f32 %v144_v55, %v143_v53 }
 0x1e0   :  { %194 = vpush %v145_v57  ;;  %v168_v58 = vrot.slane %v167_v56, 1 }
 0x1e2   :  { %v169_v59 = vadd.f32 %v168_v58, %v167_v56 }
 0x1e4   :  { %196 = vpush %v169_v59 }
 0x211   :  { %s195_s0 = spop %194 }
 0x212   :  { %v175_v61 = vstv %s195_s0 }
 0x215   :  { %s197_s18 = spop %196 }
 0x216   :  { %v173_v60 = vstv %s197_s18 }
 0x217   :  { %v174_v62 = vsel %vm172_vm6, %v173_v60, 0.0 }
 0x218   :  { %v176_v63 = vsel %vm171_vm7, %v175_v61, %v174_v62 }
 0x219   :  { %177 = vst [vmem:[#allocation2] sm:$0x1] %v176_v63 }
 0x21a   :  { %222 = shalt.err (!%p219_p4)
}
 0x21b   :  { %s223_s23 = scalar_lea.hbm %s299_s2, 16 }
 0x21c   :  { %p224_p5 = scmp.ne.s32.totalorder %s299_s2, %s223_s23  ;;  %p227_p6 = scmp.lt.u32.totalorder %s223_s23, %s299_s2 }
 0x21e   :  { %p229_p7 = pnand %p227_p6, %p224_p5 }
 0x220   :  { %232 = shalt.err (!%p229_p7)
}
 0x221   :  { %187 = dma.vmem_to_hbm [thread:$0]  %s185_s17, 16, %s299_s2, [#allocation3]  }
 0x222   :  { %233 = dma.done.wait [#allocation3], 16  }
 0x223   :  { %234 = vsyncadd [#allocation3], 4294967280 }
 0x224   :  { %191 = vsyncpa [#allocation3], 1 }

</bundles_post_ra>
